<compile_context>
chip_gen: v7x
topology: tpu7x:2x2x1
jax: 0.10.0
libtpu: 0.0.40
codegen_flags: <defaults>
</compile_context>

<pallas_src>
import functools

import jax
import jax.numpy as jnp
from jax.experimental import pallas as pl
from jax.experimental.pallas import tpu as pltpu

_LANES = 128


# ----------------------------- Pallas kernel ---------------------------------
def _critic_head_kernel(x_ref, w_ref, b_ref, o_ref, acc_ref, *, tk, k_steps):
    # grid = (M // tm, k_steps); axis 1 is the K reduction (inner axis).
    k = pl.program_id(1)

    @pl.when(k == 0)
    def _():
        acc_ref[...] = jnp.zeros_like(acc_ref)

    n_full = tk // _LANES
    rem = tk - n_full * _LANES

    # Fold the tk lanes of this K step into the 128-lane fp32 partial-sum
    # accumulator with pure VPU multiply-adds (co-issues freely under the DMA).
    for c in range(n_full):
        lo = c * _LANES
        xc = x_ref[:, lo:lo + _LANES].astype(jnp.float32)
        if k_steps == 1:
            wc = w_ref[:, lo:lo + _LANES].astype(jnp.float32)      # static slice
        else:
            # Resident full weight row: slice this K step's chunk dynamically.
            start = pl.multiple_of(k * tk + lo, _LANES)
            wc = w_ref[:, pl.ds(start, _LANES)].astype(jnp.float32)
        acc_ref[...] += xc * wc

    if rem > 0:
        # Lane remainder: only possible when the whole row fits one K step
        # (tk == K, so all slices below are static).
        xr = x_ref[:, n_full * _LANES:tk].astype(jnp.float32)
        wr = w_ref[:, n_full * _LANES:tk].astype(jnp.float32)
        acc_ref[:, 0:1] += jnp.sum(xr * wr, axis=-1, keepdims=True)

    @pl.when(k == k_steps - 1)
    def _():
        # Single cross-lane reduce + bias + masked (tm, 1) store per M tile.
        total = jnp.sum(acc_ref[...], axis=-1, keepdims=True)   # (tm, 1) fp32
        o_ref[...] = (total + b_ref[0]).astype(o_ref.dtype)


# ----------------------------- tiling heuristics ------------------------------
def _pick_tm(m, cap=512):
    """Largest multiple-of-8 divisor of m <= cap; prefer >= 2 M grid steps."""
    if m <= 8 or m % 8 != 0:
        return m                                  # full-dim block is always legal
    cap = min(cap, m)
    if m >= 16:
        cap = min(cap, (m // 2) // 8 * 8)         # leave >= 2 steps for megacore
    t = max(cap // 8 * 8, 8)
    while t >= 8:
        if m % t == 0:
            return t
        t -= 8
    return m


def _pick_tk(k, cap=2048):
    """Largest multiple-of-128 divisor of k <= cap, or the whole row."""
    if k <= cap or k % _LANES != 0:
        return k                                  # single K step (full-dim block)
    t = cap // _LANES * _LANES
    while t >= _LANES:
        if k % t == 0:
            return t
        t -= _LANES
    return k


# ----------------------------- wrapper ----------------------------------------
def critic_head(x, w, b, *, tm=None, tk=None):
    """y = x @ w.T + b with w: (1, K), b: (1,). Returns (M, 1) float32.

    x may be float32 or bfloat16; accumulation is always fp32.
    """
    m, k_dim = x.shape
    assert w.shape == (1, k_dim)
    assert b.shape == (1,)
    if tm is None:
        tm = _pick_tm(m)
    if tk is None:
        tk = _pick_tk(k_dim)
    assert m % tm == 0 and k_dim % tk == 0, (m, tm, k_dim, tk)
    k_steps = k_dim // tk
    assert k_steps == 1 or tk % _LANES == 0

    # Explicit VMEM budget: double-buffered x tile + resident weight row +
    # output / accumulator tiles, clamped below v7x's 64 MiB per-core VMEM.
    x_tile_bytes = tm * tk * x.dtype.itemsize
    est = (2 * x_tile_bytes            # double-buffered x tile
           + 2 * k_dim * 4             # resident weight row (+ buffer slack)
           + 2 * tm * _LANES * 4       # output tile (lane-padded), 2 buffers
           + tm * _LANES * 4)          # accumulator scratch
    vmem_limit = int(min(max(2 * est, 16 * 1024 * 1024), 48 * 1024 * 1024))

    kernel = functools.partial(_critic_head_kernel, tk=tk, k_steps=k_steps)
    return pl.pallas_call(
        kernel,
        out_shape=jax.ShapeDtypeStruct((m, 1), jnp.float32),
        grid_spec=pltpu.PrefetchScalarGridSpec(
            num_scalar_prefetch=0,
            grid=(m // tm, k_steps),
            in_specs=[
                # x tile, streamed and double-buffered by Pallas.
                pl.BlockSpec((tm, tk), lambda i, kk: (i, kk)),
                # Full weight row, resident in VMEM (constant index map).
                pl.BlockSpec((1, k_dim), lambda i, kk: (0, 0)),
                # Bias: single fp32 scalar in SMEM (no padded VMEM tile).
                pl.BlockSpec(memory_space=pltpu.MemorySpace.SMEM),
            ],
            out_specs=pl.BlockSpec((tm, 1), lambda i, kk: (i, 0)),
            scratch_shapes=[pltpu.VMEM((tm, _LANES), jnp.float32)],
        ),
        compiler_params=pltpu.CompilerParams(
            dimension_semantics=("parallel", "arbitrary"),
            vmem_limit_bytes=vmem_limit,
        ),
    )(x, w, b)


# ----------------------------- parameters ------------------------------------
def init_params(key, input_size):
    # nn.init.orthogonal_ on a (1, K) matrix produces a unit-norm row;
    # nn.init.constant_(bias, 0) -> zeros.
    w = jax.random.normal(key, (1, input_size), jnp.float32)
    w = w / jnp.linalg.norm(w)
    b = jnp.zeros((1,), jnp.float32)
    return w, b


# ----------------------------- main ------------------------------------------
if __name__ == "__main__":
    key = jax.random.PRNGKey(0)
    k1, k2, k3, k4, k5, k6, k7, k8 = jax.random.split(key, 8)

    def ref(x, w, b):
        return x.astype(jnp.float32) @ w.T + b

    # 1) Typical PPO critic head: (batch, hidden) = (8, 512); grid collapses
    #    to a single step (no per-step overhead at tiny shapes).
    x1 = jax.random.normal(k1, (8, 512), jnp.float32)
    w1, b1 = init_params(k2, 512)
    b1 = b1 - 0.5
    y1 = jax.jit(critic_head)(x1, w1, b1)
    jax.block_until_ready(y1)
    assert y1.shape == (8, 1)
    assert jnp.allclose(y1, ref(x1, w1, b1), atol=1e-4, rtol=1e-4)

    # 2) Multi-step K reduction + 2 M steps (exercises resident-weight slicing
    #    and the persistent-accumulator init/finalize pattern).
    x2 = jax.random.normal(k3, (16, 2048), jnp.float32)
    w2, b2 = init_params(k4, 2048)
    b2 = b2 + 0.25
    y2 = jax.jit(functools.partial(critic_head, tk=512))(x2, w2, b2)
    jax.block_until_ready(y2)
    assert jnp.allclose(y2, ref(x2, w2, b2), atol=1e-4, rtol=1e-4)

    # 3) bfloat16 activations (half the HBM bytes on this bandwidth-bound
    #    head); in-kernel accumulation stays fp32.
    x3 = jax.random.normal(k5, (32, 1024), jnp.float32).astype(jnp.bfloat16)
    w3, b3 = init_params(k6, 1024)
    y3 = jax.jit(critic_head)(x3, w3, b3)
    jax.block_until_ready(y3)
    assert jnp.allclose(y3, ref(x3, w3, b3), atol=1e-2, rtol=1e-2)

    # 4) Ragged shapes (full-dim block fallback + lane-remainder path).
    x4 = jax.random.normal(k7, (7, 300), jnp.float32)
    w4, b4 = init_params(k8, 300)
    y4 = jax.jit(critic_head)(x4, w4, b4)
    jax.block_until_ready(y4)
    assert y4.shape == (7, 1)
    assert jnp.allclose(y4, ref(x4, w4, b4), atol=1e-4, rtol=1e-4)

    print("KERNEL_OK")
</pallas_src>

<mosaic_0001>
module attributes {stable_mosaic.version = 11 : i64} {
  func.func @_critic_head_kernel(%arg0: i32, %arg1: i32, %arg2: memref<8x512xf32, #tpu.memory_space<vmem>>, %arg3: memref<1x512xf32, #tpu.memory_space<vmem>>, %arg4: memref<1xf32, #tpu.memory_space<smem>>, %arg5: memref<8x1xf32, #tpu.memory_space<vmem>>, %arg6: memref<8x128xf32, #tpu.memory_space<vmem>>) attributes {dimension_semantics = [#tpu.dimension_semantics<parallel>, #tpu.dimension_semantics<arbitrary>], iteration_bounds = array<i64: 1, 1>, scalar_prefetch = 0 : i64, scratch_operands = 1 : i64, tpu.core_type = #tpu.core_type<tc>, window_params = [{transform_indices = @transform_0, window_bounds = array<i64: 8, 512>}, {pipeline_mode = #tpu.pipeline_mode<synchronous>, transform_indices = @transform_1, window_bounds = array<i64: 1, 512>}, {transform_indices = @transform_2, window_bounds = array<i64: 1>}, {transform_indices = @transform_3, window_bounds = array<i64: 8, 1>}]} {
    %c0_i32 = arith.constant 0 : i32
    %0 = arith.cmpi eq, %arg1, %c0_i32 : i32
    %1 = arith.extui %0 : i1 to i32
    %c0_i32_0 = arith.constant 0 : i32
    %2 = arith.cmpi ne, %1, %c0_i32_0 : i32
    scf.if %2 {
      %cst = arith.constant 0.000000e+00 : f32
      %34 = vector.broadcast %cst : f32 to vector<8x128xf32>
      %c0_31 = arith.constant 0 : index
      %c0_32 = arith.constant 0 : index
      %35 = vector.load %arg6[%c0_31, %c0_32] : memref<8x128xf32, #tpu.memory_space<vmem>>, vector<8x128xf32>
      tpu.vector_store %arg6[%c0_31, %c0_32], %34 {strides = array<i32>} : memref<8x128xf32, #tpu.memory_space<vmem>>, vector<8x128xf32>,
    } else {
    }
    %c0 = arith.constant 0 : index
    %c0_1 = arith.constant 0 : index
    %3 = vector.load %arg2[%c0, %c0_1] : memref<8x512xf32, #tpu.memory_space<vmem>>, vector<8x128xf32>
    %c0_2 = arith.constant 0 : index
    %c0_3 = arith.constant 0 : index
    %4 = vector.load %arg3[%c0_2, %c0_3] : memref<1x512xf32, #tpu.memory_space<vmem>>, vector<1x128xf32>
    %c0_4 = arith.constant 0 : index
    %c0_5 = arith.constant 0 : index
    %5 = vector.load %arg6[%c0_4, %c0_5] : memref<8x128xf32, #tpu.memory_space<vmem>>, vector<8x128xf32>
    %6 = vector.broadcast %4 : vector<1x128xf32> to vector<8x128xf32>
    %7 = arith.mulf %3, %6 : vector<8x128xf32>
    %8 = arith.addf %5, %7 : vector<8x128xf32>
    %c0_6 = arith.constant 0 : index
    %c0_7 = arith.constant 0 : index
    %9 = vector.load %arg6[%c0_6, %c0_7] : memref<8x128xf32, #tpu.memory_space<vmem>>, vector<8x128xf32>
    tpu.vector_store %arg6[%c0_6, %c0_7], %8 {strides = array<i32>} : memref<8x128xf32, #tpu.memory_space<vmem>>, vector<8x128xf32>,
    %c0_8 = arith.constant 0 : index
    %c128 = arith.constant 128 : index
    %10 = vector.load %arg2[%c0_8, %c128] : memref<8x512xf32, #tpu.memory_space<vmem>>, vector<8x128xf32>
    %c0_9 = arith.constant 0 : index
    %c128_10 = arith.constant 128 : index
    %11 = vector.load %arg3[%c0_9, %c128_10] : memref<1x512xf32, #tpu.memory_space<vmem>>, vector<1x128xf32>
    %c0_11 = arith.constant 0 : index
    %c0_12 = arith.constant 0 : index
    %12 = vector.load %arg6[%c0_11, %c0_12] : memref<8x128xf32, #tpu.memory_space<vmem>>, vector<8x128xf32>
    %13 = vector.broadcast %11 : vector<1x128xf32> to vector<8x128xf32>
    %14 = arith.mulf %10, %13 : vector<8x128xf32>
    %15 = arith.addf %12, %14 : vector<8x128xf32>
    %c0_13 = arith.constant 0 : index
    %c0_14 = arith.constant 0 : index
    %16 = vector.load %arg6[%c0_13, %c0_14] : memref<8x128xf32, #tpu.memory_space<vmem>>, vector<8x128xf32>
    tpu.vector_store %arg6[%c0_13, %c0_14], %15 {strides = array<i32>} : memref<8x128xf32, #tpu.memory_space<vmem>>, vector<8x128xf32>,
    %c0_15 = arith.constant 0 : index
    %c256 = arith.constant 256 : index
    %17 = vector.load %arg2[%c0_15, %c256] : memref<8x512xf32, #tpu.memory_space<vmem>>, vector<8x128xf32>
    %c0_16 = arith.constant 0 : index
    %c256_17 = arith.constant 256 : index
    %18 = vector.load %arg3[%c0_16, %c256_17] : memref<1x512xf32, #tpu.memory_space<vmem>>, vector<1x128xf32>
    %c0_18 = arith.constant 0 : index
    %c0_19 = arith.constant 0 : index
    %19 = vector.load %arg6[%c0_18, %c0_19] : memref<8x128xf32, #tpu.memory_space<vmem>>, vector<8x128xf32>
    %20 = vector.broadcast %18 : vector<1x128xf32> to vector<8x128xf32>
    %21 = arith.mulf %17, %20 : vector<8x128xf32>
    %22 = arith.addf %19, %21 : vector<8x128xf32>
    %c0_20 = arith.constant 0 : index
    %c0_21 = arith.constant 0 : index
    %23 = vector.load %arg6[%c0_20, %c0_21] : memref<8x128xf32, #tpu.memory_space<vmem>>, vector<8x128xf32>
    tpu.vector_store %arg6[%c0_20, %c0_21], %22 {strides = array<i32>} : memref<8x128xf32, #tpu.memory_space<vmem>>, vector<8x128xf32>,
    %c0_22 = arith.constant 0 : index
    %c384 = arith.constant 384 : index
    %24 = vector.load %arg2[%c0_22, %c384] : memref<8x512xf32, #tpu.memory_space<vmem>>, vector<8x128xf32>
    %c0_23 = arith.constant 0 : index
    %c384_24 = arith.constant 384 : index
    %25 = vector.load %arg3[%c0_23, %c384_24] : memref<1x512xf32, #tpu.memory_space<vmem>>, vector<1x128xf32>
    %c0_25 = arith.constant 0 : index
    %c0_26 = arith.constant 0 : index
    %26 = vector.load %arg6[%c0_25, %c0_26] : memref<8x128xf32, #tpu.memory_space<vmem>>, vector<8x128xf32>
    %27 = vector.broadcast %25 : vector<1x128xf32> to vector<8x128xf32>
    %28 = arith.mulf %24, %27 : vector<8x128xf32>
    %29 = arith.addf %26, %28 : vector<8x128xf32>
    %c0_27 = arith.constant 0 : index
    %c0_28 = arith.constant 0 : index
    %30 = vector.load %arg6[%c0_27, %c0_28] : memref<8x128xf32, #tpu.memory_space<vmem>>, vector<8x128xf32>
    tpu.vector_store %arg6[%c0_27, %c0_28], %29 {strides = array<i32>} : memref<8x128xf32, #tpu.memory_space<vmem>>, vector<8x128xf32>,
    %c0_i32_29 = arith.constant 0 : i32
    %31 = arith.cmpi eq, %arg1, %c0_i32_29 : i32
    %32 = arith.extui %31 : i1 to i32
    %c0_i32_30 = arith.constant 0 : i32
    %33 = arith.cmpi ne, %32, %c0_i32_30 : i32
    scf.if %33 {
      %c0_31 = arith.constant 0 : index
      %c0_32 = arith.constant 0 : index
      %34 = vector.load %arg6[%c0_31, %c0_32] : memref<8x128xf32, #tpu.memory_space<vmem>>, vector<8x128xf32>
      %cst = arith.constant dense<0.000000e+00> : vector<8xf32>
      %35 = vector.multi_reduction <add>, %34, %cst [1] : vector<8x128xf32> to vector<8xf32>
      %36 = vector.shape_cast %35 : vector<8xf32> to vector<8x1xf32>
      %c0_33 = arith.constant 0 : index
      %37 = memref.load %arg4[%c0_33] : memref<1xf32, #tpu.memory_space<smem>>
      %38 = vector.broadcast %37 : f32 to vector<8x1xf32>
      %39 = arith.addf %36, %38 : vector<8x1xf32>
      %c0_34 = arith.constant 0 : index
      %c0_35 = arith.constant 0 : index
      %40 = vector.load %arg5[%c0_34, %c0_35] : memref<8x1xf32, #tpu.memory_space<vmem>>, vector<8x1xf32>
      tpu.vector_store %arg5[%c0_34, %c0_35], %39 {strides = array<i32>} : memref<8x1xf32, #tpu.memory_space<vmem>>, vector<8x1xf32>,
    } else {
    }
    return
  }
  func.func @transform_0(%arg0: i32, %arg1: i32) -> (i32, i32) {
    %c0_i32 = arith.constant 0 : i32
    return %arg0, %arg1 : i32, i32
  }
  func.func @transform_1(%arg0: i32, %arg1: i32) -> (i32, i32) {
    %c0_i32 = arith.constant 0 : i32
    %c0_i32_0 = arith.constant 0 : i32
    %c0_i32_1 = arith.constant 0 : i32
    return %c0_i32, %c0_i32_0 : i32, i32
  }
  func.func @transform_2(%arg0: i32, %arg1: i32) -> i32 {
    %c0_i32 = arith.constant 0 : i32
    %c0_i32_0 = arith.constant 0 : i32
    return %c0_i32 : i32
  }
  func.func @transform_3(%arg0: i32, %arg1: i32) -> (i32, i32) {
    %c0_i32 = arith.constant 0 : i32
    %c0_i32_0 = arith.constant 0 : i32
    return %arg0, %c0_i32 : i32, i32
  }
}

</mosaic_0001>

<bundles_post_ra>
// kernel: critic_head.1
= control target key start
LH: loop header
LB: loop body
LE: loop exit
PB: predicated region body
PF: predicated region fallthrough
CT: control target
= control target key end

     0   :  { %9 = vsyncpa [#allocation5], 0  ;;  %s125_s12 = smov [#allocation4]   ;;  %s176_s0 = inlined_call_operand.hbm [shape: f32[8,512], index: 0, kind: input, shape index: {}]   ;;  %s177_s1 = inlined_call_operand.vmem [shape: f32[1,512], index: 1, kind: input, shape index: {}]   ;;  %s178_s2 = inlined_call_operand.<no memory space> [shape: f32[1], index: 2, kind: input, shape index: {}]   ;;  %s179_s3 = inlined_call_operand.vmem [shape: f32[8,1], index: 3, kind: output, shape index: {}]  }
   0x1   :  { %s16_s13 = sshll.u32 %s125_s12, 4  ;;  %s101_s16 = scalar_lea.hbm %s176_s0, 512  ;;  %s17_s13 = int_to_ptr.vmem [resolvable:$true] %s16_s13 }
   0x2   :  { %p102_p0 = scmp.ne.s32.totalorder %s176_s0, %s101_s16  ;;  %p105_p1 = scmp.lt.u32.totalorder %s101_s16, %s176_s0 }
   0x4   :  { %p107_p2 = pnand %p105_p1, %p102_p0 }
   0x6   :  { %110 = shalt.err (!%p107_p2)
}
   0x7   :  { %s111_s21 = scalar_lea.vmem %s17_s13, 512  ;;  %p116_p4 = scmp.lt.s32.totalorder %s17_s13, %s17_s13 }
   0x8   :  { %p112_p3 = scmp.ne.s32.totalorder %s17_s13, %s111_s21  ;;  %p117_p5 = scmp.lt.s32.totalorder %s111_s21, %s111_s21 }
   0xa   :  { %p118_p6 = por %p117_p5, %p116_p4 }
   0xc   :  { %p119_p7 = pnand %p118_p6, %p112_p3 }
   0xe   :  { %122 = shalt.err (!%p119_p7)
}
   0xf   :  { %19 = dma.hbm_to_vmem [thread:$0]  %s176_s0, 512, %s17_s13, [#allocation5]  }
  0x10   :  { %123 = dma.done.wait [#allocation5], 512  }
  0x11   :  { %124 = vsyncadd [#allocation5], 4294966784  ;;  %v32_v0 = vld [vmem:[#allocation4] sm:$0xff]  ;;  %v44_v2 = vld [vmem:[#allocation4 + $0x8] sm:$0xff]  ;;  %v87_v15 = vstv %s178_s2  ;;  %vm89_vm0 = vcmask 7168  }
  0x12   :  { %v96_v1 = vld [vmem:[%s177_s1] ss:$0 sm:$0xff]  ;;  %v97_v4 = vld [vmem:[%s177_s1 + $0x1] ss:$0 sm:$0xff]  ;;  %v56_v5 = vld [vmem:[#allocation4 + $0x10] sm:$0xff] }
  0x13   :  { %v41_v3 = vmul.f32 %v96_v1, %v32_v0  ;;  %v98_v6 = vld [vmem:[%s177_s1 + $0x2] ss:$0 sm:$0xff]  ;;  %v53_v7 = vmul.f32 %v97_v4, %v44_v2  ;;  %v68_v9 = vld [vmem:[#allocation4 + $0x18] sm:$0xff]  ;;  %v99_v10 = vld [vmem:[%s177_s1 + $0x3] ss:$0 sm:$0xff] }
  0x14   :  { %v65_v8 = vmul.f32 %v98_v6, %v56_v5  ;;  %v77_v12 = vmul.f32 %v99_v10, %v68_v9 }
  0x15   :  { %v54_v11 = vadd.f32 %v53_v7, %v41_v3 }
  0x17   :  { %v66_v13 = vadd.f32 %v65_v8, %v54_v11 }
  0x19   :  { %v78_v14 = vadd.f32 %v77_v12, %v66_v13 }
  0x1b   :  { %84 = vadd.xlane.f32.xlu0 %v78_v14 }
  0xa8   :  { %v85_v16 = vpop.xlane.xlu0 %84 }
  0xa9   :  { %v88_v17 = vadd.f32 %v87_v15, %v85_v16 }
  0xab   :  { %90 = vst.msk [vmem:[%s179_s3] sm:$0xff] %vm89_vm0, %v88_v17 }
  0xac   :  { %95 = vsyncpa [#allocation5], 1 }

</bundles_post_ra>
